<compile_context>
chip_gen: v7x
topology: tpu7x:2x2x1
jax: 0.10.0
libtpu: 0.0.40
codegen_flags: <defaults>
</compile_context>

<pallas_src>
import functools

import jax
import jax.numpy as jnp
from jax.experimental import pallas as pl
from jax.experimental.pallas import tpu as pltpu


def _round_up(x, m):
    return ((x + m - 1) // m) * m


def mlp_kernel(x_ref, w1_ref, b1_ref, w2_ref, b2_ref, o_ref, *, num_classes):
    # Cast the f32 row tile to bf16 in VMEM (x streams from HBM exactly once, no pre-pass).
    x = x_ref[...].astype(jnp.bfloat16)
    # hidden = relu(x @ W1 + b1): bf16 MXU matmul with f32 accumulation, f32 epilogue.
    h = jnp.dot(x, w1_ref[...], preferred_element_type=jnp.float32)
    h = jnp.maximum(h + b1_ref[...], 0.0)                      # (tile_n, Hp) + (1, Hp)
    # Dropout(p=0.5) is the identity in inference mode (self.training == False).
    # TODO(synk): training-mode dropout would use pltpu.prng_seed + pltpu.prng_random_bits.
    out = jnp.dot(h.astype(jnp.bfloat16), w2_ref[...],
                  preferred_element_type=jnp.float32)          # (tile_n, Cp)
    out = out + b2_ref[...]                                    # (tile_n, Cp) + (1, Cp)
    # Store only the real classes: unpadded (tile_n, C) block -> tiny HBM writeback,
    # no post-kernel slice needed. Zero-padded W2 rows / b1 columns guarantee no leakage.
    o_ref[...] = out[:, :num_classes].astype(o_ref.dtype)


def prepare_mlp_params(w1, b1, w2, b2):
    """One-time (model-load) weight prep, hoisted out of the per-forward path:
    pad H / C up to lane-dense multiples of 128 and cast matmul operands to bf16.
    """
    # TODO(synk): for v6e/v7x, padding F (matmul-1 contraction dim) to a multiple of 256
    # at data-prep time (x and W1 together) would give an evenly-fed 256-deep MXU.
    F, H = w1.shape
    C = w2.shape[1]
    Hp = _round_up(H, 128)
    Cp = _round_up(C, 128)
    w1_p = jnp.zeros((F, Hp), jnp.bfloat16).at[:, :H].set(w1.astype(jnp.bfloat16))
    b1_p = jnp.zeros((1, Hp), jnp.float32).at[0, :H].set(b1.astype(jnp.float32))
    w2_p = jnp.zeros((Hp, Cp), jnp.bfloat16).at[:H, :C].set(w2.astype(jnp.bfloat16))
    b2_p = jnp.zeros((1, Cp), jnp.float32).at[0, :C].set(b2.astype(jnp.float32))
    return {"w1": w1_p, "b1": b1_p, "w2": w2_p, "b2": b2_p, "num_classes": int(C)}


def _pick_tile_n(N, F, Hp, Cp, *, target=1024, vmem_budget=20 * 1024 * 1024):
    """Largest 8-aligned row tile that (a) fits a conservative VMEM budget (safe on
    v7x's 64 MiB VMEM as well as v5e/v6e's 128 MiB) and (b) leaves >= 2 grid steps so
    the ("parallel",) row axis can be sharded across v7x's two TensorCores."""
    lane = lambda d: _round_up(d, 128)          # minor-dim lane padding inside VMEM
    per_row = (2 * lane(F) * 4                  # double-buffered f32 x tile
               + lane(Hp) * 4                   # hidden activations (f32)
               + lane(Cp) * 4                   # logits before slicing (f32)
               + 2 * lane(Cp) * 4)              # double-buffered output block (over-estimate)
    resident = (F * Hp + Hp * Cp) * 2 + (Hp + Cp) * 4   # single-buffered weights + biases
    fit = max(8, (vmem_budget - resident) // per_row)
    tile = min(target, fit, pl.cdiv(N, 2), N)
    return max(8, _round_up(tile, 8))


def _invariant_spec(shape):
    # Block-invariant operand (same block every grid step): single-buffer it so the
    # default double buffering doesn't hold two VMEM copies of the weights.
    return pl.BlockSpec(shape, lambda i: (0, 0), pipeline_mode=pl.Buffered(1))


@functools.partial(jax.jit, static_argnames=("num_classes", "tile_n"))
def _mlp_pallas(x, w1_p, b1_p, w2_p, b2_p, *, num_classes, tile_n):
    N, F = x.shape
    Hp = w1_p.shape[1]
    Cp = w2_p.shape[1]
    C = num_classes
    grid = (pl.cdiv(N, tile_n),)   # ragged last block handled by Pallas (masked stores)

    flops = 2 * N * (F * Hp + Hp * Cp)
    bytes_accessed = (N * F * x.dtype.itemsize          # single pass over x
                      + (F * Hp + Hp * Cp) * 2          # bf16 weights
                      + (Hp + Cp) * 4                   # f32 biases
                      + N * C * 4)                      # unpadded f32 logits

    return pl.pallas_call(
        functools.partial(mlp_kernel, num_classes=C),
        out_shape=jax.ShapeDtypeStruct((N, C), jnp.float32),
        grid_spec=pltpu.PrefetchScalarGridSpec(
            num_scalar_prefetch=0,
            grid=grid,
            in_specs=[
                # x row tile: default double buffering so DMA of tile i+1 overlaps compute.
                pl.BlockSpec((tile_n, F), lambda i: (i, 0)),
                _invariant_spec((F, Hp)),    # W1 (bf16), block-invariant
                _invariant_spec((1, Hp)),    # b1 (f32)
                _invariant_spec((Hp, Cp)),   # W2 (bf16), block-invariant
                _invariant_spec((1, Cp)),    # b2 (f32)
            ],
            out_specs=pl.BlockSpec((tile_n, C), lambda i: (i, 0)),
        ),
        compiler_params=pltpu.CompilerParams(
            dimension_semantics=("parallel",),      # independent row blocks -> megacore-shardable
            vmem_limit_bytes=32 * 1024 * 1024,
        ),
        cost_estimate=pl.CostEstimate(
            flops=flops, transcendentals=0, bytes_accessed=bytes_accessed),
    )(x, w1_p, b1_p, w2_p, b2_p)


def mlp_forward(x, params, *, tile_n=None):
    """Linear(F->H) -> ReLU -> Dropout(eval, identity) -> Linear(H->C)."""
    N, F = x.shape
    Hp = params["w1"].shape[1]
    Cp = params["w2"].shape[1]
    if tile_n is None:
        tile_n = _pick_tile_n(N, F, Hp, Cp)
    return _mlp_pallas(x, params["w1"], params["b1"], params["w2"], params["b2"],
                       num_classes=params["num_classes"], tile_n=int(tile_n))


if __name__ == "__main__":
    # Small synthetic stand-in for Cora: N nodes, F input features, H hidden, C classes.
    N, F, H, C = 128, 256, 32, 8

    key = jax.random.PRNGKey(0)
    kx, kw1, kb1, kw2, kb2 = jax.random.split(key, 5)

    x = jax.random.normal(kx, (N, F), dtype=jnp.float32)
    # Deterministic parameter init (scaled like PyTorch's default uniform fan-in init).
    w1 = jax.random.uniform(kw1, (F, H), dtype=jnp.float32,
                            minval=-1.0, maxval=1.0) / jnp.sqrt(F)
    b1 = jax.random.uniform(kb1, (H,), dtype=jnp.float32,
                            minval=-1.0, maxval=1.0) / jnp.sqrt(F)
    w2 = jax.random.uniform(kw2, (H, C), dtype=jnp.float32,
                            minval=-1.0, maxval=1.0) / jnp.sqrt(H)
    b2 = jax.random.uniform(kb2, (C,), dtype=jnp.float32,
                            minval=-1.0, maxval=1.0) / jnp.sqrt(H)

    # Pad / cast weights exactly once (model-load time), not per forward call.
    params = prepare_mlp_params(w1, b1, w2, b2)

    out = mlp_forward(x, params)
    out = jax.block_until_ready(out)
    assert out.shape == (N, C)
    assert out.dtype == jnp.float32

    # Reference mirroring the kernel's bf16-operand / f32-accumulate path.
    xb = x.astype(jnp.bfloat16).astype(jnp.float32)
    w1b = w1.astype(jnp.bfloat16).astype(jnp.float32)
    w2b = w2.astype(jnp.bfloat16).astype(jnp.float32)
    h_ref = jnp.maximum(xb @ w1b + b1, 0.0)
    ref = h_ref.astype(jnp.bfloat16).astype(jnp.float32) @ w2b + b2
    assert jnp.allclose(out, ref, atol=1e-2, rtol=1e-2), "mismatch vs bf16-path reference"

    # Sanity-check against the pure-f32 reference at bf16-level tolerance.
    ref_f32 = jnp.maximum(x @ w1 + b1, 0.0) @ w2 + b2
    assert jnp.allclose(out, ref_f32, atol=5e-2, rtol=5e-2), "mismatch vs f32 reference"

    print("KERNEL_OK")
</pallas_src>

<mosaic_0001>
module attributes {stable_mosaic.version = 11 : i64} {
  func.func @mlp_kernel(%arg0: i32, %arg1: memref<64x256xf32, #tpu.memory_space<vmem>>, %arg2: memref<256x128xbf16, #tpu.memory_space<vmem>>, %arg3: memref<1x128xf32, #tpu.memory_space<vmem>>, %arg4: memref<128x128xbf16, #tpu.memory_space<vmem>>, %arg5: memref<1x128xf32, #tpu.memory_space<vmem>>, %arg6: memref<64x8xf32, #tpu.memory_space<vmem>>) attributes {dimension_semantics = [#tpu.dimension_semantics<parallel>], iteration_bounds = array<i64: 2>, scalar_prefetch = 0 : i64, scratch_operands = 0 : i64, tpu.core_type = #tpu.core_type<tc>, window_params = [{transform_indices = @transform_0, window_bounds = array<i64: 64, 256>}, {pipeline_mode = #tpu.pipeline_mode<synchronous>, transform_indices = @transform_1, window_bounds = array<i64: 256, 128>}, {pipeline_mode = #tpu.pipeline_mode<synchronous>, transform_indices = @transform_2, window_bounds = array<i64: 1, 128>}, {pipeline_mode = #tpu.pipeline_mode<synchronous>, transform_indices = @transform_3, window_bounds = array<i64: 128, 128>}, {pipeline_mode = #tpu.pipeline_mode<synchronous>, transform_indices = @transform_4, window_bounds = array<i64: 1, 128>}, {transform_indices = @transform_5, window_bounds = array<i64: 64, 8>}]} {
    %c0 = arith.constant 0 : index
    %c0_0 = arith.constant 0 : index
    %0 = vector.load %arg1[%c0, %c0_0] : memref<64x256xf32, #tpu.memory_space<vmem>>, vector<64x256xf32>
    %1 = arith.truncf %0 : vector<64x256xf32> to vector<64x256xbf16>
    %c0_1 = arith.constant 0 : index
    %c0_2 = arith.constant 0 : index
    %2 = vector.load %arg2[%c0_1, %c0_2] : memref<256x128xbf16, #tpu.memory_space<vmem>>, vector<256x128xbf16>
    %cst = arith.constant dense<0.000000e+00> : vector<64x128xf32>
    %3 = tpu.matmul %1, %2, %cst {dimension_numbers = #tpu.dot_dimension_numbers<[1], [0], [0], [1], [0, 0, 1, 1], [], []>} : vector<64x256xbf16>, vector<256x128xbf16>, vector<64x128xf32> -> vector<64x128xf32>
    %c0_3 = arith.constant 0 : index
    %c0_4 = arith.constant 0 : index
    %4 = vector.load %arg3[%c0_3, %c0_4] : memref<1x128xf32, #tpu.memory_space<vmem>>, vector<1x128xf32>
    %5 = vector.broadcast %4 : vector<1x128xf32> to vector<64x128xf32>
    %6 = arith.addf %3, %5 : vector<64x128xf32>
    %cst_5 = arith.constant 0.000000e+00 : f32
    %7 = vector.broadcast %cst_5 : f32 to vector<64x128xf32>
    %8 = arith.maximumf %6, %7 : vector<64x128xf32>
    %9 = arith.truncf %8 : vector<64x128xf32> to vector<64x128xbf16>
    %c0_6 = arith.constant 0 : index
    %c0_7 = arith.constant 0 : index
    %10 = vector.load %arg4[%c0_6, %c0_7] : memref<128x128xbf16, #tpu.memory_space<vmem>>, vector<128x128xbf16>
    %cst_8 = arith.constant dense<0.000000e+00> : vector<64x128xf32>
    %11 = tpu.matmul %9, %10, %cst_8 {dimension_numbers = #tpu.dot_dimension_numbers<[1], [0], [0], [1], [0, 0, 1, 1], [], []>} : vector<64x128xbf16>, vector<128x128xbf16>, vector<64x128xf32> -> vector<64x128xf32>
    %c0_9 = arith.constant 0 : index
    %c0_10 = arith.constant 0 : index
    %12 = vector.load %arg5[%c0_9, %c0_10] : memref<1x128xf32, #tpu.memory_space<vmem>>, vector<1x128xf32>
    %13 = vector.broadcast %12 : vector<1x128xf32> to vector<64x128xf32>
    %14 = arith.addf %11, %13 : vector<64x128xf32>
    %15 = vector.extract_strided_slice %14 {offsets = [0, 0], sizes = [64, 8], strides = [1, 1]} : vector<64x128xf32> to vector<64x8xf32>
    %c0_11 = arith.constant 0 : index
    %c0_12 = arith.constant 0 : index
    %16 = vector.load %arg6[%c0_11, %c0_12] : memref<64x8xf32, #tpu.memory_space<vmem>>, vector<64x8xf32>
    tpu.vector_store %arg6[%c0_11, %c0_12], %15 {strides = array<i32>} : memref<64x8xf32, #tpu.memory_space<vmem>>, vector<64x8xf32>,
    return
  }
  func.func @transform_0(%arg0: i32) -> (i32, i32) {
    %c0_i32 = arith.constant 0 : i32
    %c0_i32_0 = arith.constant 0 : i32
    return %arg0, %c0_i32 : i32, i32
  }
  func.func @transform_1(%arg0: i32) -> (i32, i32) {
    %c0_i32 = arith.constant 0 : i32
    %c0_i32_0 = arith.constant 0 : i32
    %c0_i32_1 = arith.constant 0 : i32
    return %c0_i32, %c0_i32_0 : i32, i32
  }
  func.func @transform_2(%arg0: i32) -> (i32, i32) {
    %c0_i32 = arith.constant 0 : i32
    %c0_i32_0 = arith.constant 0 : i32
    %c0_i32_1 = arith.constant 0 : i32
    return %c0_i32, %c0_i32_0 : i32, i32
  }
  func.func @transform_3(%arg0: i32) -> (i32, i32) {
    %c0_i32 = arith.constant 0 : i32
    %c0_i32_0 = arith.constant 0 : i32
    %c0_i32_1 = arith.constant 0 : i32
    return %c0_i32, %c0_i32_0 : i32, i32
  }
  func.func @transform_4(%arg0: i32) -> (i32, i32) {
    %c0_i32 = arith.constant 0 : i32
    %c0_i32_0 = arith.constant 0 : i32
    %c0_i32_1 = arith.constant 0 : i32
    return %c0_i32, %c0_i32_0 : i32, i32
  }
  func.func @transform_5(%arg0: i32) -> (i32, i32) {
    %c0_i32 = arith.constant 0 : i32
    %c0_i32_0 = arith.constant 0 : i32
    return %arg0, %c0_i32 : i32, i32
  }
}

</mosaic_0001>

<bundles_post_ra>
// kernel: _mlp_pallas.1
= control target key start
LH: loop header
LB: loop body
LE: loop exit
PB: predicated region body
PF: predicated region fallthrough
CT: control target
= control target key end

     0   :  { %10 = vsyncpa [#allocation3], 0  ;;  %s1328_s0 = inlined_call_operand.hbm [shape: f32[128,256], index: 0, kind: input, shape index: {}]   ;;  %s1329_s1 = inlined_call_operand.hbm [shape: bf16[256,128], index: 1, kind: input, shape index: {}]   ;;  %s1330_s2 = inlined_call_operand.vmem [shape: f32[1,128], index: 2, kind: input, shape index: {}]   ;;  %s1331_s3 = inlined_call_operand.hbm [shape: bf16[128,128], index: 3, kind: input, shape index: {}]   ;;  %s1332_s4 = inlined_call_operand.vmem [shape: f32[1,128], index: 4, kind: input, shape index: {}]   ;;  %s1333_s5 = inlined_call_operand.vmem [shape: f32[128,8], index: 5, kind: output, shape index: {}]  }
   0x1   :  { %12 = vsyncpa [#allocation3 + $0x1], 0 }
   0x2   :  { %13 = vsyncpa [#allocation5], 0  ;;  %s1118_s18 = smov 0   ;;  %s1120_s19 = smov 0  }
   0x3   :  { %s1122_s20 = smov 0   ;;  %s1124_s21 = smov 0  }
   0x4 LB: > { %s745_s22 = sadd.s32 4294967295, %s1079_s21   ;;  %p39_p0 = scmp.ne.s32.totalorder %s1071_s19, %s1067_s18  ;;  %s1079_s21 = sphi %s1124_s21, %s1349_s21   ;;  %s1075_s20 = sphi %s1122_s20, %s1348_s20   ;;  %s1071_s19 = sphi %s1120_s19, %s1347_s19   ;;  %s1067_s18 = sphi %s1118_s18, %s1346_s18  }
   0x5   : > { %p1140_p1 = scmp.eq.s32.totalorder %s745_s22, 0  ;;  %p747_p2 = scmp.ge.s32.totalorder %s1079_s21, 1 }
   0x6   : > { %p160_p3 = scmp.lt.s32.totalorder %s1079_s21, 3  ;;  %s1081_s26 = smov [#allocation4]  }
   0x7   : > { %s1338_s23 = scalar_select %p1140_p1, 1, 0 }
   0x8   : > { %p1148_p4 = por %p1140_p1, %p39_p0  ;;  %p1152_p5 = pnand %p747_p2, %p160_p3 }
   0x9   : > { %s172_s27 = sshll.u32 %s1081_s26, 4  ;;  %s1082_s29 = smov [#allocation6]   ;;  %s173_s27 = int_to_ptr.vmem [resolvable:$true] %s172_s27 }
   0xa   : > { %s1339_s24 = scalar_select %p1148_p4, 1, 0 }
   0xb   : > { %s1340_s25 = scalar_select %p1152_p5, 1, 0 }
   0xc   : > { %p877_p6 = pneg %p1152_p5  ;;  %s188_s30 = sshll.u32 %s1082_s29, 4  ;;  %s1164_s30 = int_to_ptr.vmem [resolvable:$true] %s188_s30 }
   0xd   : > { %s955_s8 = scalar_lea.hbm %s1329_s1, 2048 }
   0xe   : > { %p1160_p7 = pnand %p877_p6, %p1140_p1  ;;  %p956_p8 = scmp.ne.s32.totalorder %s1329_s1, %s955_s8 }
   0xf   : > { %p962_p12 = scmp.lt.u32.totalorder %s955_s8, %s1329_s1 }
  0x10   : > { %p957_p9 = pneg %p1160_p7 }
  0x12   : > { %p958_p10 = pnand %p957_p9, %p956_p8 }
  0x14   : > { %p959_p11 = pneg %p958_p10 }
  0x16   : > { %p964_p13 = pnand %p962_p12, %p959_p11 }
  0x18   : > { %967 = shalt.err (!%p964_p13)
}
  0x19   : > { %s968_s13 = scalar_lea.vmem %s173_s27, 2048  ;;  %p976_p6 = scmp.lt.s32.totalorder %s173_s27, %s173_s27 }
  0x1a   : > { %p969_p0 = scmp.ne.s32.totalorder %s173_s27, %s968_s13  ;;  %p977_p1 = scmp.lt.s32.totalorder %s968_s13, %s968_s13 }
  0x1c   : > { %p971_p2 = pnand %p969_p0, %p957_p9  ;;  %p978_p4 = por %p977_p1, %p976_p6 }
  0x1e   : > { %p972_p3 = pneg %p971_p2 }
  0x20   : > { %p979_p5 = pnand %p978_p4, %p972_p3 }
  0x22   : > { %982 = shalt.err (!%p979_p5)
}
  0x23   : > { %s1083_s14 = smov 64   ;;  %s1084_s15 = smov 4  }
  0x24   : > { %880 = dma.hbm_to_vmem [thread:$0]  (!%p1160_p7), %s1329_s1, 2048, %s173_s27, [#allocation5], %s1083_s14, %s1083_s14, %s1084_s15  }
  0x25   : > { %s983_s29 = scalar_lea.hbm %s1331_s3, 1024 }
  0x26   : > { %p984_p8 = scmp.ne.s32.totalorder %s1331_s3, %s983_s29  ;;  %p990_p5 = scmp.lt.u32.totalorder %s983_s29, %s1331_s3 }
  0x28   : > { %p986_p1 = pnand %p984_p8, %p957_p9 }
  0x2a   : > { %p987_p4 = pneg %p986_p1 }
  0x2c   : > { %p992_p10 = pnand %p990_p5, %p987_p4 }
  0x2e   : > { %995 = shalt.err (!%p992_p10)
}
  0x2f   : > { %s996_s27 = scalar_lea.vmem %s1164_s30, 1024  ;;  %p1004_p0 = scmp.lt.s32.totalorder %s1164_s30, %s1164_s30 }
  0x30   : > { %p997_p11 = scmp.ne.s32.totalorder %s1164_s30, %s996_s27  ;;  %p1005_p2 = scmp.lt.s32.totalorder %s996_s27, %s996_s27 }
  0x32   : > { %p999_p12 = pnand %p997_p11, %p957_p9  ;;  %p1006_p3 = por %p1005_p2, %p1004_p0 }
  0x34   : > { %p1000_p13 = pneg %p999_p12 }
  0x36   : > { %p1007_p6 = pnand %p1006_p3, %p1000_p13 }
  0x38   : > { %1010 = shalt.err (!%p1007_p6)
}
  0x39   : > { %883 = dma.hbm_to_vmem [thread:$0]  (!%p1160_p7), %s1331_s3, 1024, %s1164_s30, [#allocation5], %s1083_s14, %s1083_s14, %s1084_s15  }
  0x3a   : > { %s1214_s12 = sadd.s32 1, %s1079_s21   ;;  %s26_s13 = sadd.s32 1, %s1075_s20 }
  0x3b   : > { %s23_s28 = ssub.s32 %s1079_s21, %s1214_s12  ;;  %p33_p9 = scmp.ne.s32.totalorder %s1075_s20, %s1071_s19 }
  0x3c   : > { %p24_p8 = scmp.eq.s32.totalorder %s23_s28, 0  ;;  %p34_p1 = scmp.eq.s32.totalorder %s1079_s21, 0 }
  0x3d   : > { %p890_p4 = scmp.lt.s32.totalorder %s1079_s21, 2  ;;  %s205_s16 = sand.u32 1, %s1075_s20  }
  0x3e   : > { %s1225_s17 = scalar_select %p24_p8, %s1075_s20, %s26_s13  }
  0x3f   : > { %p35_p5 = por %p34_p1, %p33_p9  ;;  %s751_s18 = sshll.u32 %s205_s16, 7 }
  0x40   : > { %s790_s26 = sshll.u32 %s1079_s21, 11  ;;  %s209_s30 = scalar_lea.vmem [#allocation2], %s751_s18 }
  0x41   : > { %s1231_s7 = scalar_lea.hbm %s1328_s0, %s790_s26  ;;  %s217_s14 = sshll.u32 %s209_s30, 4  ;;  %s1237_s14 = int_to_ptr.vmem [resolvable:$true] %s217_s14 }
  0x42   : > { %p1233_p7 = pnand %p890_p4, %p35_p5  ;;  %s1239_s8 = scalar_lea.sflag [#allocation3], %s205_s16 }
  0x43   : > { %s1011_s9 = scalar_lea.hbm %s1231_s7, 2048  ;;  %s1016_s11 = scalar_lea.hbm %s1328_s0, 4096 }
  0x44   : > { %p1012_p10 = scmp.ne.s32.totalorder %s1231_s7, %s1011_s9  ;;  %p1013_p11 = pneg %p1233_p7 }
  0x45   : > { %p1017_p0 = scmp.lt.u32.totalorder %s1231_s7, %s1328_s0  ;;  %p1018_p2 = scmp.lt.u32.totalorder %s1016_s11, %s1011_s9 }
  0x46   : > { %p1014_p12 = pnand %p1013_p11, %p1012_p10  ;;  %p1020_p6 = scmp.lt.u32.totalorder %s1011_s9, %s1231_s7 }
  0x47   : > { %p1019_p3 = por %p1018_p2, %p1017_p0 }
  0x48   : > { %p1015_p13 = pneg %p1014_p12 }
  0x49   : > { %p1021_p9 = por %p1020_p6, %p1019_p3 }
  0x4b   : > { %p1022_p8 = pnand %p1021_p9, %p1015_p13 }
  0x4d   : > { %1025 = shalt.err (!%p1022_p8)
}
  0x4e   : > { %s1026_s16 = scalar_lea.vmem %s1237_s14, 2048  ;;  %s1085_s18 = smov [#allocation2]  }
  0x4f   : > { %p1027_p1 = scmp.ne.s32.totalorder %s1237_s14, %s1026_s16  ;;  %s1031_s26 = sshll.u32 %s1085_s18, 4  ;;  %s1032_s26 = int_to_ptr.vmem [resolvable:$false] %s1031_s26 }
  0x50   : > { %s1033_s29 = scalar_lea.vmem %s1032_s26, 4096  ;;  %p1034_p10 = scmp.lt.s32.totalorder %s1237_s14, %s1032_s26 }
  0x51   : > { %p1029_p4 = pnand %p1027_p1, %p1013_p11  ;;  %p1035_p12 = scmp.lt.s32.totalorder %s1033_s29, %s1026_s16 }
  0x53   : > { %p1030_p5 = pneg %p1029_p4  ;;  %p1036_p0 = por %p1035_p12, %p1034_p10 }
  0x55   : > { %p1037_p2 = pnand %p1036_p0, %p1030_p5 }
  0x57   : > { %1040 = shalt.err (!%p1037_p2)
}
  0x58   : > { %s1086_s6 = smov 256   ;;  %s1087_s30 = smov 16  }
  0x59   : > { %887 = dma.hbm_to_vmem [thread:$0]  (!%p1233_p7), %s1231_s7, 2048, %s1237_s14, %s1239_s8, %s1086_s6, %s1086_s6, %s1087_s30  }
  0x5a   : > { %p1343_p11 = scmp.ne.s32.totalorder %s1340_s25, 0 }
  0x5b   : > { %s231_s9 = sand.u32 (!%p1343_p11), 1, %s1071_s19   ;;  %p1344_p13 = scmp.ne.s32.totalorder (!%p1343_p11), %s1339_s24, 0 }
  0x5c   : > { %229 = sbr.rel (%p1343_p11) target bundleno = 601 (0x259), region = 40  ;;  %s756_s27 = sshll.u32 (!%p1343_p11), %s231_s9, 7 }
  0x5d   : > { %s232_s10 = scalar_lea.sflag (!%p1343_p11), [#allocation3], %s231_s9  ;;  %s1270_s11 = scalar_lea.vmem (!%p1343_p11), [#allocation2], %s756_s27 }
  0x63   : > { %1058 = dma.done.wait (%p1344_p13), %s232_s10, 2048  }
  0x64   : > { %1060 = vsyncadd (%p1344_p13), %s232_s10, 4294965248  ;;  %p1345_p3 = scmp.ne.s32.totalorder %s1338_s23, 0 }
  0x66   : > { %1062 = dma.done.wait (%p1345_p3), [#allocation5], 3072  }
  0x67   : > { %1064 = vsyncadd (%p1345_p3), [#allocation5], 4294964224  ;;  %v931_v0 = vld [vmem:[#allocation4 + $0x40] sm:$0xff]   ;;  %v933_v2 = vld [vmem:[#allocation4 + $0x48] sm:$0xff]   ;;  %s759_s25 = sshll.u32 %s745_s22, 3  ;;  %vm650_vm0 = vcmask 64512  }
  0x68   : > { %v932_v1 = vld [vmem:[#allocation4] sm:$0xff]   ;;  %791 = vmatprep.subr.bf16.mxu0 %v931_v0  ;;  %v934_v3 = vld [vmem:[#allocation4 + $0x8] sm:$0xff]   ;;  %v935_v4 = vld [vmem:[#allocation4 + $0x50] sm:$0xff]   ;;  %p272_p7 = scmp.lt.s32.totalorder %s759_s25, 15 }
  0x69   : > { %792 = vmatpush3.bf16.msra.mxu0 %v932_v1  ;;  %v936_v5 = vld [vmem:[#allocation4 + $0x10] sm:$0xff]   ;;  %v937_v6 = vld [vmem:[#allocation4 + $0x58] sm:$0xff]   ;;  %v939_v8 = vld [vmem:[#allocation4 + $0x60] sm:$0xff]  }
  0x6a   : > { %793 = vmatprep.subr.bf16.mxu0 %v933_v2  ;;  %v938_v7 = vld [vmem:[#allocation4 + $0x18] sm:$0xff]   ;;  %v940_v9 = vld [vmem:[#allocation4 + $0x20] sm:$0xff]   ;;  %v941_v10 = vld [vmem:[#allocation4 + $0x68] sm:$0xff]   ;;  %s1351_s25 = smov (!%p272_p7, %s759_s25), 15 }
  0x6b   : > { %v279_v11 = vld [vmem:[%s1270_s11 + $0x8] sm:$0xff]  ;;  %v281_v12 = vld [vmem:[%s1270_s11 + $0x18] sm:$0xff]  ;;  %v943_v15 = vld [vmem:[#allocation4 + $0x70] sm:$0xff]   ;;  %s760_s7 = sshll.u32 %s1351_s25, 3 }
  0x6c   : > { %v295_v13 = vpack.c.bf16 %v281_v12, %v279_v11  ;;  %v942_v14 = vld [vmem:[#allocation4 + $0x28] sm:$0xff]   ;;  %v944_v16 = vld [vmem:[#allocation4 + $0x30] sm:$0xff]   ;;  %v945_v17 = vld [vmem:[#allocation4 + $0x78] sm:$0xff]   ;;  %s275_s28 = scalar_lea.vmem %s1333_s5, %s760_s7 }
  0x6d   : > { %794 = vmatpush3.bf16.msra.mxu0 %v934_v3  ;;  %v947_v18 = vld [vmem:[#allocation6] sm:$0xff]   ;;  %v948_v19 = vld [vmem:[#allocation6 + $0x8] sm:$0xff]   ;;  %v949_v20 = vld [vmem:[#allocation6 + $0x10] sm:$0xff]  }
  0x6e   : > { %795 = vmatprep.subr.bf16.mxu0 %v935_v4  ;;  %469 = vmatprep.mubr.bf16.mxu0 %v295_v13  ;;  %v946_v21 = vld [vmem:[#allocation4 + $0x38] sm:$0xff]   ;;  %v278_v22 = vld [vmem:[%s1270_s11] sm:$0xff]  ;;  %v280_v23 = vld [vmem:[%s1270_s11 + $0x10] sm:$0xff] }
  0x6f   : > { %843 = vmatprep.subr.bf16.mxu1 %v947_v18  ;;  %v283_v24 = vld [vmem:[%s1270_s11 + $0x28] sm:$0xff]  ;;  %v285_v25 = vld [vmem:[%s1270_s11 + $0x38] sm:$0xff]  ;;  %v294_v26 = vpack.c.bf16 %v280_v23, %v278_v22  ;;  %v282_v28 = vld [vmem:[%s1270_s11 + $0x20] sm:$0xff] }
  0x70   : > { %844 = vmatpush3.bf16.msra.mxu1 %v947_v18  ;;  %v297_v27 = vpack.c.bf16 %v285_v25, %v283_v24  ;;  %v284_v29 = vld [vmem:[%s1270_s11 + $0x30] sm:$0xff]  ;;  %v287_v30 = vld [vmem:[%s1270_s11 + $0x48] sm:$0xff]  ;;  %v289_v31 = vld [vmem:[%s1270_s11 + $0x58] sm:$0xff] }
  0x71   : > { %796 = vmatpush3.bf16.msra.mxu0 %v936_v5  ;;  %845 = vmatprep.subr.bf16.mxu1 %v948_v19  ;;  %v296_v32 = vpack.c.bf16 %v284_v29, %v282_v28  ;;  %v299_v33 = vpack.c.bf16 %v289_v31, %v287_v30  ;;  %v286_v34 = vld [vmem:[%s1270_s11 + $0x40] sm:$0xff]  ;;  %v288_v35 = vld [vmem:[%s1270_s11 + $0x50] sm:$0xff]  ;;  %v291_v36 = vld [vmem:[%s1270_s11 + $0x68] sm:$0xff] }
  0x72   : > { %797 = vmatprep.subr.bf16.mxu0 %v937_v6  ;;  %v293_v37 = vld [vmem:[%s1270_s11 + $0x78] sm:$0xff]  ;;  %v298_v38 = vpack.c.bf16 %v288_v35, %v286_v34  ;;  %v290_v40 = vld [vmem:[%s1270_s11 + $0x60] sm:$0xff]  ;;  %v292_v41 = vld [vmem:[%s1270_s11 + $0x70] sm:$0xff] }
  0x73   : > { %v301_v39 = vpack.c.bf16 %v293_v37, %v291_v36  ;;  %v300_v42 = vpack.c.bf16 %v292_v41, %v290_v40  ;;  %v950_v43 = vld [vmem:[#allocation6 + $0x18] sm:$0xff]   ;;  %v951_v44 = vld [vmem:[#allocation6 + $0x20] sm:$0xff]   ;;  %v952_v45 = vld [vmem:[#allocation6 + $0x28] sm:$0xff]  }
  0x74   : > { %846 = vmatpush3.bf16.msra.mxu1 %v948_v19  ;;  %v953_v46 = vld [vmem:[#allocation6 + $0x30] sm:$0xff]   ;;  %v954_v47 = vld [vmem:[#allocation6 + $0x38] sm:$0xff]   ;;  %v761_v50 = vld [vmem:[%s1330_s2] ss:$0 sm:$0xff] }
  0x75   : > { %798 = vmatpush3.bf16.msra.mxu0 %v938_v7  ;;  %847 = vmatprep.subr.bf16.mxu1 %v949_v20  ;;  %v778_v29 = vld [vmem:[%s1332_s4] ss:$0 sm:$0xff] }
  0x76   : > { %799 = vmatprep.subr.bf16.mxu0 %v939_v8 }
  0x78   : > { %848 = vmatpush3.bf16.msra.mxu1 %v949_v20 }
  0x79   : > { %800 = vmatpush3.bf16.msra.mxu0 %v940_v9  ;;  %849 = vmatprep.subr.bf16.mxu1 %v950_v43 }
  0x7a   : > { %801 = vmatprep.subr.bf16.mxu0 %v941_v10 }
  0x7c   : > { %850 = vmatpush3.bf16.msra.mxu1 %v950_v43 }
  0x7d   : > { %802 = vmatpush3.bf16.msra.mxu0 %v942_v14  ;;  %851 = vmatprep.subr.bf16.mxu1 %v951_v44 }
  0x7e   : > { %803 = vmatprep.subr.bf16.mxu0 %v943_v15 }
  0x80   : > { %852 = vmatpush3.bf16.msra.mxu1 %v951_v44 }
  0x81   : > { %804 = vmatpush3.bf16.msra.mxu0 %v944_v16  ;;  %853 = vmatprep.subr.bf16.mxu1 %v952_v45 }
  0x82   : > { %805 = vmatprep.subr.bf16.mxu0 %v945_v17 }
  0x84   : > { %854 = vmatpush3.bf16.msra.mxu1 %v952_v45 }
  0x85   : > { %806 = vmatpush3.bf16.msra.mxu0 %v946_v21  ;;  %855 = vmatprep.subr.bf16.mxu1 %v953_v46 }
  0x88   : > { %470 = vmatmul.mubr.bf16.vlgmr.msra.gmra.mrb[0].mxu0 %v294_v26  ;;  %856 = vmatpush3.bf16.msra.mxu1 %v953_v46 }
  0x89   : > { %477 = vmatprep.mubr.bf16.mxu0 %v297_v27  ;;  %857 = vmatprep.subr.bf16.mxu1 %v954_v47 }
  0x8c   : > { %858 = vmatpush3.bf16.msra.mxu1 %v954_v47 }
  0x90   : > { %478 = vmatmul.mubr.bf16.gmra.mrb[4].mxu0 %v296_v32 }
  0x91   : > { %485 = vmatprep.mubr.bf16.mxu0 %v299_v33 }
  0x98   : > { %486 = vmatmul.mubr.bf16.gmra.mrb[8].mxu0 %v298_v38 }
  0x99   : > { %493 = vmatprep.mubr.bf16.mxu0 %v301_v39 }
  0xa0   : > { %494 = vmatmul.mubr.bf16.gmra.mrb[12].mxu0 %v300_v42 }
 0x15b   : > { %v807_v48 = vpop.f32.mrb[0].mxu0 }
 0x15c   : > { %v808_v49 = vpop.f32.mrb[1].mxu0 }
 0x15d   : > { %v809_v51 = vadd.f32 %v808_v49, %v807_v48  ;;  %v810_v52 = vpop.f32.mrb[2].mxu0 }
 0x15e   : > { %v811_v53 = vpop.f32.mrb[3].mxu0 }
 0x15f   : > { %v812_v54 = vadd.f32 %v811_v53, %v810_v52  ;;  %v472_v55 = vadd.f32 %v809_v51, %v761_v50 }
 0x161   : > { %v475_v56 = vadd.f32 %v812_v54, %v761_v50  ;;  %v502_v58 = vmax.f32 %v472_v55, 0.0 }
 0x163   : > { %v813_v57 = vpop.f32.mrb[4].mxu0  ;;  %v503_v59 = vmax.f32 %v475_v56, 0.0 }
 0x164   : > { %v814_v60 = vpop.f32.mrb[5].mxu0 }
 0x165   : > { %v815_v61 = vadd.f32 %v814_v60, %v813_v57  ;;  %v816_v62 = vpop.f32.mrb[6].mxu0  ;;  %v510_v63 = vpack.c.bf16 %v503_v59, %v502_v58 }
 0x166   : > { %v817_v0 = vpop.f32.mrb[7].mxu0 }
 0x167   : > { %v480_v1 = vadd.f32 %v815_v61, %v761_v50  ;;  %v818_v2 = vadd.f32 %v817_v0, %v816_v62  ;;  %859 = vmatprep.mubr.bf16.mxu1 %v510_v63 }
 0x169   : > { %v483_v3 = vadd.f32 %v818_v2, %v761_v50  ;;  %v504_v4 = vmax.f32 %v480_v1, 0.0 }
 0x16b   : > { %v505_v5 = vmax.f32 %v483_v3, 0.0  ;;  %v819_v6 = vpop.f32.mrb[8].mxu0 }
 0x16c   : > { %v820_v7 = vpop.f32.mrb[9].mxu0 }
 0x16d   : > { %v821_v8 = vadd.f32 %v820_v7, %v819_v6  ;;  %v822_v9 = vpop.f32.mrb[10].mxu0  ;;  %v511_v10 = vpack.c.bf16 %v505_v5, %v504_v4 }
 0x16e   : > { %v823_v11 = vpop.f32.mrb[11].mxu0 }
 0x16f   : > { %v488_v12 = vadd.f32 %v821_v8, %v761_v50  ;;  %v824_v13 = vadd.f32 %v823_v11, %v822_v9  ;;  %860 = vmatmul.mubr.bf16.vlgmr.msra.gmra.mrb[0].mxu1 %v511_v10 }
 0x171   : > { %v491_v14 = vadd.f32 %v824_v13, %v761_v50  ;;  %v506_v15 = vmax.f32 %v488_v12, 0.0 }
 0x173   : > { %v507_v16 = vmax.f32 %v491_v14, 0.0  ;;  %v825_v17 = vpop.f32.mrb[12].mxu0 }
 0x174   : > { %v826_v18 = vpop.f32.mrb[13].mxu0 }
 0x175   : > { %v827_v19 = vadd.f32 %v826_v18, %v825_v17  ;;  %v828_v20 = vpop.f32.mrb[14].mxu0  ;;  %v512_v21 = vpack.c.bf16 %v507_v16, %v506_v15 }
 0x176   : > { %v829_v22 = vpop.f32.mrb[15].mxu0 }
 0x177   : > { %v496_v23 = vadd.f32 %v827_v19, %v761_v50  ;;  %v830_v24 = vadd.f32 %v829_v22, %v828_v20  ;;  %863 = vmatprep.mubr.bf16.mxu1 %v512_v21 }
 0x179   : > { %v499_v25 = vadd.f32 %v830_v24, %v761_v50  ;;  %v508_v26 = vmax.f32 %v496_v23, 0.0 }
 0x17b   : > { %v509_v27 = vmax.f32 %v499_v25, 0.0 }
 0x17d   : > { %v513_v28 = vpack.c.bf16 %v509_v27, %v508_v26 }
 0x17f   : > { %864 = vmatmul.mubr.bf16.gmra.mrb[4].mxu1 %v513_v28 }
 0x242   : > { %v861_v30 = vpop.f32.mrb[0].mxu1 }
 0x243   : > { %v628_v31 = vadd.f32 %v861_v30, %v778_v29  ;;  %v619_v32 = vpop.f32.mrb[1].mxu1 }
 0x244   : > { %v620_v33 = vadd.f32 %v778_v29, %v619_v32  ;;  %v862_v34 = vpop.f32.mrb[2].mxu1 }
 0x245   : > { %653 = vst.msk [vmem:[%s275_s28 + $0x10] sm:$0xff] %vm650_vm0, %v628_v31  ;;  %v631_v35 = vadd.f32 %v862_v34, %v778_v29  ;;  %v622_v36 = vpop.f32.mrb[3].mxu1 }
 0x246   : > { %651 = vst.msk [vmem:[%s275_s28] sm:$0xff] %vm650_vm0, %v620_v33  ;;  %v623_v37 = vadd.f32 %v778_v29, %v622_v36 }
 0x247   : > { %654 = vst.msk [vmem:[%s275_s28 + $0x18] sm:$0xff] %vm650_vm0, %v631_v35 }
 0x248   : > { %652 = vst.msk [vmem:[%s275_s28 + $0x8] sm:$0xff] %vm650_vm0, %v623_v37 }
 0x252   : > { %v865_v38 = vpop.f32.mrb[4].mxu1 }
 0x253   : > { %v644_v39 = vadd.f32 %v865_v38, %v778_v29  ;;  %v635_v40 = vpop.f32.mrb[5].mxu1 }
 0x254   : > { %v636_v41 = vadd.f32 %v778_v29, %v635_v40  ;;  %v866_v42 = vpop.f32.mrb[6].mxu1 }
 0x255   : > { %657 = vst.msk [vmem:[%s275_s28 + $0x30] sm:$0xff] %vm650_vm0, %v644_v39  ;;  %v647_v43 = vadd.f32 %v866_v42, %v778_v29  ;;  %v638_v44 = vpop.f32.mrb[7].mxu1 }
 0x256   : > { %655 = vst.msk [vmem:[%s275_s28 + $0x20] sm:$0xff] %vm650_vm0, %v636_v41  ;;  %v639_v45 = vadd.f32 %v778_v29, %v638_v44 }
 0x257   : > { %658 = vst.msk [vmem:[%s275_s28 + $0x38] sm:$0xff] %vm650_vm0, %v647_v43 }
 0x258   : > { %656 = vst.msk [vmem:[%s275_s28 + $0x28] sm:$0xff] %vm650_vm0, %v639_v45 }
 0x259 PF: > { %p16_p6 = scmp.ge.s32.totalorder %s1214_s12, 4   ;;  %s1346_s18 = smov %s1071_s19 }
 0x25a   : > { %s1347_s19 = smov %s1075_s20  ;;  %s1348_s20 = smov %s1225_s17 }
 0x25b   : > { %s1349_s21 = smov %s1214_s12  ;;  %18 = sbr.rel (!%p16_p6) target bundleno = 4 (0x4), region = 88 }
 0x262   :  { %681 = vsyncpa [#allocation3], 1 }
 0x263   :  { %683 = vsyncpa [#allocation3 + $0x1], 1 }
 0x264   :  { %684 = vsyncpa [#allocation5], 1 }

</bundles_post_ra>
